<compile_context>
chip_gen: v5e
topology: v5e:2x2
jax: 0.10.0
libtpu: 0.0.40
codegen_flags: <defaults>
</compile_context>

<pallas_src>
import jax
import jax.numpy as jnp
from jax.experimental import pallas as pl
from jax.experimental.pallas import tpu as pltpu


def _awp_forward_kernel(x_ref, w1_ref, b1_ref, w2_ref, b2_ref, o_ref):
    # x tile arrives in its original dtype (single HBM pass); cast in VMEM.
    x = x_ref[...].astype(w1_ref.dtype)
    h32 = jnp.dot(x, w1_ref[...], preferred_element_type=jnp.float32)
    # bias + ReLU in the compute dtype: feeds the second matmul directly.
    h = jnp.maximum(h32.astype(w2_ref.dtype) + b1_ref[...], 0)
    y = jnp.dot(h, w2_ref[...], preferred_element_type=jnp.float32)
    o_ref[...] = (y + b2_ref[...]).astype(o_ref.dtype)


def _round_up(n, m):
    return (n + m - 1) // m * m


def prepare_awp_params(w1, b1, w2, b2, compute_dtype=jnp.bfloat16):
    """Cast + lane-pad the model parameters ONCE (parameter-setup time).

    Zero-padding is exact: padded columns/rows contribute 0 through both
    matmuls, bias pads are 0, and ReLU(0) = 0.
    """
    b1 = jnp.asarray(b1).reshape(1, -1)          # tolerate 1-D Linear biases
    b2 = jnp.asarray(b2).reshape(1, -1)
    in_f, hid_f = w1.shape
    out_f = w2.shape[1]
    hid_p = _round_up(hid_f, 128)
    out_p = _round_up(out_f, 128)
    w1c = jnp.pad(w1.astype(compute_dtype), ((0, 0), (0, hid_p - hid_f)))
    b1c = jnp.pad(b1.astype(compute_dtype), ((0, 0), (0, hid_p - hid_f)))
    w2c = jnp.pad(w2.astype(compute_dtype),
                  ((0, hid_p - hid_f), (0, out_p - out_f)))
    b2c = jnp.pad(b2.astype(jnp.float32), ((0, 0), (0, out_p - out_f)))
    return w1c, b1c, w2c, b2c


def awp_forward(x, w1c, b1c, w2c, b2c, *, out_features, block_batch=256):
    """AWP.forward(x) == model(x); params must come from prepare_awp_params()."""
    batch, in_f = x.shape
    hid_p = w1c.shape[1]
    out_p = w2c.shape[1]
    out_dtype = x.dtype

    # Batch tiling: bf16-sublane / MXU-friendly multiples; no padded copy of x.
    sub = 16 if batch >= 16 else 8
    tb = min(block_batch, _round_up(batch, sub))
    # v7x megacore: ensure >= 2 batch tiles (when batch is big enough) so the
    # "parallel" batch axis can be sharded across both TensorCores.
    if pl.cdiv(batch, tb) < 2 and batch > 2 * sub:
        tb = _round_up(pl.cdiv(batch, 2), sub)
    grid = (pl.cdiv(batch, tb),)

    # Advisory cost for XLA's scheduler around the custom call.
    flops = 2 * batch * (in_f * hid_p + hid_p * out_p)
    bytes_accessed = int(
        x.size * x.dtype.itemsize
        + sum(a.size * a.dtype.itemsize for a in (w1c, b1c, w2c, b2c))
        + batch * out_p * jnp.dtype(out_dtype).itemsize)

    # VMEM budget: single-buffered resident weights/biases + double-buffered
    # x/out tiles, with headroom; capped at ~7/8 of this chip's VMEM
    # (~112 MiB on v5e/v6e, ~56 MiB on v7x).
    weight_bytes = sum(a.size * a.dtype.itemsize for a in (w1c, b1c, w2c, b2c))
    io_bytes = (2 * tb * in_f * x.dtype.itemsize
                + 2 * tb * out_p * jnp.dtype(out_dtype).itemsize)
    vmem_needed = weight_bytes + io_bytes
    try:
        vmem_cap = int(pltpu.get_tpu_info().vmem_capacity_bytes)
    except Exception:
        vmem_cap = 64 << 20
    vmem_limit = int(min(max(vmem_needed * 5 // 4 + (2 << 20), 16 << 20),
                         vmem_cap * 7 // 8))

    resident = dict(pipeline_mode=pl.Buffered(1))   # weights never change block

    y_pad = pl.pallas_call(
        _awp_forward_kernel,
        out_shape=jax.ShapeDtypeStruct((batch, out_p), out_dtype),
        grid_spec=pltpu.PrefetchScalarGridSpec(
            num_scalar_prefetch=0,
            grid=grid,
            in_specs=[
                pl.BlockSpec((tb, in_f), lambda i: (i, 0)),              # x tile
                pl.BlockSpec((in_f, hid_p), lambda i: (0, 0), **resident),   # w1
                pl.BlockSpec((1, hid_p), lambda i: (0, 0), **resident),      # b1
                pl.BlockSpec((hid_p, out_p), lambda i: (0, 0), **resident),  # w2
                pl.BlockSpec((1, out_p), lambda i: (0, 0), **resident),      # b2
            ],
            out_specs=pl.BlockSpec((tb, out_p), lambda i: (i, 0)),
        ),
        compiler_params=pltpu.CompilerParams(
            dimension_semantics=("parallel",),
            vmem_limit_bytes=vmem_limit,
        ),
        cost_estimate=pl.CostEstimate(
            flops=flops, transcendentals=0, bytes_accessed=bytes_accessed),
    )(x, w1c, b1c, w2c, b2c)

    # Lane-dense (128-multiple) output is sliced back to the logical width.
    return y_pad[:, :out_features]


def reference_forward(x, w1, b1, w2, b2, compute_dtype=jnp.bfloat16):
    # Same dtype plan as the kernel: bf16 matmul operands, f32 accumulation,
    # bf16 hidden bias-add/ReLU, f32 final bias-add.
    b1 = jnp.asarray(b1).reshape(1, -1)
    b2 = jnp.asarray(b2).reshape(1, -1)
    h = jnp.dot(x.astype(compute_dtype), w1.astype(compute_dtype),
                preferred_element_type=jnp.float32)
    h = jnp.maximum(h.astype(compute_dtype) + b1.astype(compute_dtype), 0)
    y = jnp.dot(h, w2.astype(compute_dtype),
                preferred_element_type=jnp.float32) + b2.astype(jnp.float32)
    return y.astype(x.dtype)


if __name__ == "__main__":
    # Small shapes consistent with a classifier forward: batch=8, in=32,
    # hidden=64, classes=16.  (Params are padded to 128 lanes in prepare().)
    batch, in_f, hid_f, out_f = 8, 32, 64, 16

    key = jax.random.PRNGKey(0)
    kx, k1, k2, k3, k4 = jax.random.split(key, 5)

    x = jax.random.normal(kx, (batch, in_f), dtype=jnp.float32)
    # Deterministic parameter init (synthetic, no checkpoint load).
    w1 = jax.random.normal(k1, (in_f, hid_f), dtype=jnp.float32) * 0.1
    b1 = jax.random.normal(k2, (hid_f,), dtype=jnp.float32) * 0.01   # 1-D bias
    w2 = jax.random.normal(k3, (hid_f, out_f), dtype=jnp.float32) * 0.1
    b2 = jax.random.normal(k4, (out_f,), dtype=jnp.float32) * 0.01

    # Parameter-setup time: cast + pad weights once.
    params = prepare_awp_params(w1, b1, w2, b2)

    fwd = jax.jit(awp_forward, static_argnames=("out_features", "block_batch"))
    y = jax.block_until_ready(fwd(x, *params, out_features=out_f))
    y_ref = reference_forward(x, w1, b1, w2, b2)

    assert y.shape == (batch, out_f), y.shape
    assert jnp.allclose(y, y_ref, atol=1e-2, rtol=1e-2), "mismatch vs reference"

    print("KERNEL_OK")
</pallas_src>

<mosaic_0001>
module attributes {stable_mosaic.version = 11 : i64} {
  func.func @_awp_forward_kernel(%arg0: i32, %arg1: memref<8x32xf32, #tpu.memory_space<vmem>>, %arg2: memref<32x128xbf16, #tpu.memory_space<vmem>>, %arg3: memref<1x128xbf16, #tpu.memory_space<vmem>>, %arg4: memref<128x128xbf16, #tpu.memory_space<vmem>>, %arg5: memref<1x128xf32, #tpu.memory_space<vmem>>, %arg6: memref<8x128xf32, #tpu.memory_space<vmem>>) attributes {dimension_semantics = [#tpu.dimension_semantics<parallel>], iteration_bounds = array<i64: 1>, scalar_prefetch = 0 : i64, scratch_operands = 0 : i64, tpu.core_type = #tpu.core_type<tc>, window_params = [{transform_indices = @transform_0, window_bounds = array<i64: 8, 32>}, {pipeline_mode = #tpu.pipeline_mode<synchronous>, transform_indices = @transform_1, window_bounds = array<i64: 32, 128>}, {pipeline_mode = #tpu.pipeline_mode<synchronous>, transform_indices = @transform_2, window_bounds = array<i64: 1, 128>}, {pipeline_mode = #tpu.pipeline_mode<synchronous>, transform_indices = @transform_3, window_bounds = array<i64: 128, 128>}, {pipeline_mode = #tpu.pipeline_mode<synchronous>, transform_indices = @transform_4, window_bounds = array<i64: 1, 128>}, {transform_indices = @transform_5, window_bounds = array<i64: 8, 128>}]} {
    %c0 = arith.constant 0 : index
    %c0_0 = arith.constant 0 : index
    %0 = vector.load %arg1[%c0, %c0_0] : memref<8x32xf32, #tpu.memory_space<vmem>>, vector<8x32xf32>
    %1 = arith.truncf %0 : vector<8x32xf32> to vector<8x32xbf16>
    %c0_1 = arith.constant 0 : index
    %c0_2 = arith.constant 0 : index
    %2 = vector.load %arg2[%c0_1, %c0_2] : memref<32x128xbf16, #tpu.memory_space<vmem>>, vector<32x128xbf16>
    %cst = arith.constant dense<0.000000e+00> : vector<8x128xf32>
    %3 = tpu.matmul %1, %2, %cst {dimension_numbers = #tpu.dot_dimension_numbers<[1], [0], [0], [1], [0, 0, 1, 1], [], []>} : vector<8x32xbf16>, vector<32x128xbf16>, vector<8x128xf32> -> vector<8x128xf32>
    %4 = arith.truncf %3 : vector<8x128xf32> to vector<8x128xbf16>
    %c0_3 = arith.constant 0 : index
    %c0_4 = arith.constant 0 : index
    %5 = vector.load %arg3[%c0_3, %c0_4] : memref<1x128xbf16, #tpu.memory_space<vmem>>, vector<1x128xbf16>
    %6 = vector.broadcast %5 : vector<1x128xbf16> to vector<8x128xbf16>
    %7 = arith.addf %4, %6 : vector<8x128xbf16>
    %cst_5 = arith.constant 0.000000e+00 : bf16
    %8 = vector.broadcast %cst_5 : bf16 to vector<8x128xbf16>
    %9 = arith.maximumf %7, %8 : vector<8x128xbf16>
    %c0_6 = arith.constant 0 : index
    %c0_7 = arith.constant 0 : index
    %10 = vector.load %arg4[%c0_6, %c0_7] : memref<128x128xbf16, #tpu.memory_space<vmem>>, vector<128x128xbf16>
    %cst_8 = arith.constant dense<0.000000e+00> : vector<8x128xf32>
    %11 = tpu.matmul %9, %10, %cst_8 {dimension_numbers = #tpu.dot_dimension_numbers<[1], [0], [0], [1], [0, 0, 1, 1], [], []>} : vector<8x128xbf16>, vector<128x128xbf16>, vector<8x128xf32> -> vector<8x128xf32>
    %c0_9 = arith.constant 0 : index
    %c0_10 = arith.constant 0 : index
    %12 = vector.load %arg5[%c0_9, %c0_10] : memref<1x128xf32, #tpu.memory_space<vmem>>, vector<1x128xf32>
    %13 = vector.broadcast %12 : vector<1x128xf32> to vector<8x128xf32>
    %14 = arith.addf %11, %13 : vector<8x128xf32>
    %c0_11 = arith.constant 0 : index
    %c0_12 = arith.constant 0 : index
    %15 = vector.load %arg6[%c0_11, %c0_12] : memref<8x128xf32, #tpu.memory_space<vmem>>, vector<8x128xf32>
    tpu.vector_store %arg6[%c0_11, %c0_12], %14 {strides = array<i32>} : memref<8x128xf32, #tpu.memory_space<vmem>>, vector<8x128xf32>,
    return
  }
  func.func @transform_0(%arg0: i32) -> (i32, i32) {
    %c0_i32 = arith.constant 0 : i32
    %c0_i32_0 = arith.constant 0 : i32
    return %arg0, %c0_i32 : i32, i32
  }
  func.func @transform_1(%arg0: i32) -> (i32, i32) {
    %c0_i32 = arith.constant 0 : i32
    %c0_i32_0 = arith.constant 0 : i32
    %c0_i32_1 = arith.constant 0 : i32
    return %c0_i32, %c0_i32_0 : i32, i32
  }
  func.func @transform_2(%arg0: i32) -> (i32, i32) {
    %c0_i32 = arith.constant 0 : i32
    %c0_i32_0 = arith.constant 0 : i32
    %c0_i32_1 = arith.constant 0 : i32
    return %c0_i32, %c0_i32_0 : i32, i32
  }
  func.func @transform_3(%arg0: i32) -> (i32, i32) {
    %c0_i32 = arith.constant 0 : i32
    %c0_i32_0 = arith.constant 0 : i32
    %c0_i32_1 = arith.constant 0 : i32
    return %c0_i32, %c0_i32_0 : i32, i32
  }
  func.func @transform_4(%arg0: i32) -> (i32, i32) {
    %c0_i32 = arith.constant 0 : i32
    %c0_i32_0 = arith.constant 0 : i32
    %c0_i32_1 = arith.constant 0 : i32
    return %c0_i32, %c0_i32_0 : i32, i32
  }
  func.func @transform_5(%arg0: i32) -> (i32, i32) {
    %c0_i32 = arith.constant 0 : i32
    %c0_i32_0 = arith.constant 0 : i32
    return %arg0, %c0_i32 : i32, i32
  }
}

</mosaic_0001>

<bundles_post_ra>
// kernel: awp_forward.1
= control target key start
LH: loop header
LB: loop body
LE: loop exit
PB: predicated region body
PF: predicated region fallthrough
CT: control target
= control target key end

     0   :  { %10 = vsyncpa [#allocation3], 0  ;;  %s429_s0 = inlined_call_operand.hbm [shape: f32[8,32], index: 0, kind: input, shape index: {}]   ;;  %s430_s1 = inlined_call_operand.hbm [shape: bf16[32,128], index: 1, kind: input, shape index: {}]   ;;  %s431_s2 = inlined_call_operand.vmem [shape: bf16[1,128], index: 2, kind: input, shape index: {}]   ;;  %s432_s3 = inlined_call_operand.hbm [shape: bf16[128,128], index: 3, kind: input, shape index: {}]   ;;  %s433_s4 = inlined_call_operand.vmem [shape: f32[1,128], index: 4, kind: input, shape index: {}]   ;;  %s434_s5 = inlined_call_operand.hbm [shape: f32[8,128], index: 5, kind: output, shape index: {}]  }
   0x1   :  { %11 = vsyncpa [#allocation6], 0  ;;  %s28_s20 = sshll.u32 %s430_s1, 4  ;;  %s29_s20 = int_to_ptr.hbm [resolvable:$true] %s28_s20 }
   0x2   :  { %12 = vsyncpa [#allocation4], 0  ;;  %s375_s21 = smov [#allocation5]   ;;  %s18_s25 = sshll.u32 %s429_s0, 4  ;;  %s19_s25 = int_to_ptr.hbm [resolvable:$true] %s18_s25 }
   0x3   :  { %s30_s22 = sshll.u32 %s375_s21, 4  ;;  %s376_s26 = smov 64   ;;  %s31_s22 = int_to_ptr.vmem [resolvable:$true] %s30_s22 }
   0x4   :  { %s377_s27 = smov 4   ;;  %s378_s28 = smov [#allocation2]  }
   0x5   :  { %36 = dma.hbm_to_vmem [thread:$0]  %s29_s20, 256, %s31_s22, [#allocation6], %s376_s26, %s376_s26, %s377_s27  }
   0x6   :  { %s20_s29 = sshll.u32 %s378_s28, 4  ;;  %s43_s7 = sshll.u32 %s432_s3, 4  ;;  %s21_s29 = int_to_ptr.vmem [resolvable:$true] %s20_s29  ;;  %s44_s7 = int_to_ptr.hbm [resolvable:$true] %s43_s7 }
   0x7   :  { %23 = dma.hbm_to_vmem [thread:$0]  %s19_s25, 128, %s21_s29, [#allocation3]  }
   0x8   :  { %s379_s1 = smov [#allocation7]  }
   0x9   :  { %s45_s8 = sshll.u32 %s379_s1, 4  ;;  %s46_s8 = int_to_ptr.vmem [resolvable:$true] %s45_s8 }
   0xa   :  { %51 = dma.hbm_to_vmem [thread:$0]  %s44_s7, 1024, %s46_s8, [#allocation6], %s376_s26, %s376_s26, %s377_s27  }
   0xb   :  { %369 = dma.done.wait [#allocation3], 128  }
   0xc   :  { %370 = vsyncadd [#allocation3], 4294967168 }
   0xd   :  { %371 = dma.done.wait [#allocation6], 1280  }
   0xe   :  { %372 = vsyncadd [#allocation6], 4294966016  ;;  %v257_v0 = vld [vmem:[#allocation5 + $0x8] sm:$0xff]  ;;  %v256_v2 = vld [vmem:[#allocation5] sm:$0xff]  ;;  %vm85_vm0 = vcmask 261120   ;;  %s380_s11 = smov [#allocation8]  }
   0xf   :  { %v265_v1 = vld [vmem:[#allocation7 + $0x38] sm:$0xff]  ;;  %95 = vmatpush.bf16.msra.mxu0 %v257_v0  ;;  %v67_v3 = vld [vmem:[#allocation2] sm:$0xff]  ;;  %v264_v4 = vld [vmem:[#allocation7 + $0x30] sm:$0xff]  ;;  %s202_s12 = sshll.u32 %s380_s11, 4  ;;  %s203_s12 = int_to_ptr.vmem [resolvable:$true] %s202_s12 }
  0x10   :  { %183 = vmatpush.bf16.msra.mxu1 %v265_v1  ;;  %v68_v5 = vpack.c.bf16 %v67_v3, %v67_v3  ;;  %v263_v6 = vld [vmem:[#allocation7 + $0x28] sm:$0xff]  ;;  %v262_v7 = vld [vmem:[#allocation7 + $0x20] sm:$0xff]  ;;  %v261_v8 = vld [vmem:[#allocation7 + $0x18] sm:$0xff] }
  0x11   :  { %v260_v9 = vld [vmem:[#allocation7 + $0x10] sm:$0xff]  ;;  %v259_v10 = vld [vmem:[#allocation7 + $0x8] sm:$0xff]  ;;  %v258_v11 = vld [vmem:[#allocation7] sm:$0xff] }
  0x12   :  { %v103_v12 = vld [vmem:[%s431_s2] sm:$0x1]  ;;  %s204_s2 = sshll.u32 %s434_s5, 4  ;;  %s205_s2 = int_to_ptr.hbm [resolvable:$true] %s204_s2 }
  0x13   :  { %96 = vmatpush.bf16.msra.mxu0 %v256_v2  ;;  %v105_v13 = vpack.i.b16 %v103_v12, %v103_v12  ;;  %v272_v23 = vld [vmem:[%s433_s4] ss:$0 sm:$0xff] }
  0x14   :  { %184 = vmatpush.bf16.msra.mxu1 %v264_v4 }
  0x15   :  { %v107_v14 = vperm.slane %v105_v13, 0 }
  0x16   :  { %223 = vmatmul.msk.bf16.vlgmr.msra.gmra.mxu0 %vm85_vm0, %v68_v5 }
  0x17   :  { %v109_v17 = vunpack.c.l.bf16 %v107_v14 }
  0x18   :  { %185 = vmatpush.bf16.msra.mxu1 %v263_v6 }
  0x1c   :  { %186 = vmatpush.bf16.msra.mxu1 %v262_v7 }
  0x20   :  { %187 = vmatpush.bf16.msra.mxu1 %v261_v8 }
  0x24   :  { %188 = vmatpush.bf16.msra.mxu1 %v260_v9 }
  0x28   :  { %189 = vmatpush.bf16.msra.mxu1 %v259_v10 }
  0x2c   :  { %190 = vmatpush.bf16.msra.mxu1 %v258_v11 }
  0x93   :  { %v98_v15 = vpop.f32.mrf.mxu0 }
  0x94   :  { %v102_v16 = vpack.c.bf16 %v98_v15, %v98_v15 }
  0x96   :  { %v108_v18 = vunpack.c.l.bf16 %v102_v16 }
  0x98   :  { %v110_v19 = vadd.f32 %v109_v17, %v108_v18 }
  0x9a   :  { %v113_v20 = vmax.f32 %v110_v19, 0.0 }
  0x9b   :  { %v100_v21 = vpop.f32.mrf.mxu0 }
  0x9c   :  { %v114_v22 = vpack.c.bf16 %v113_v20, %v113_v20 }
  0x9e   :  { %191 = vmatmul.bf16.vlgmr.msra.gmra.mxu1 %v114_v22 }
 0x11b   :  { %v192_v24 = vpop.f32.mrf.mxu1 }
 0x11c   :  { %v193_v25 = vadd.f32 %v272_v23, %v192_v24 }
 0x11e   :  { %196 = vst [vmem:[#allocation8] sm:$0xff] %v193_v25 }
 0x11f   :  { %207 = dma.vmem_to_hbm [thread:$0]  %s203_s12, 128, %s205_s2, [#allocation4]  }
 0x123   :  { %v194_v26 = vpop.f32.mrf.mxu1 }
 0x124   :  { %373 = dma.done.wait [#allocation4], 128  }
 0x125   :  { %374 = vsyncadd [#allocation4], 4294967168 }
 0x126   :  { %212 = vsyncpa [#allocation3], 1 }
 0x127   :  { %213 = vsyncpa [#allocation6], 1 }
 0x128   :  { %214 = vsyncpa [#allocation4], 1 }

</bundles_post_ra>
